<compile_context>
chip_gen: v5e
topology: v5e:2x2
jax: 0.10.0
libtpu: 0.0.40
codegen_flags: <defaults>
</compile_context>

<pallas_src>
import jax
import jax.numpy as jnp
from jax.experimental import pallas as pl
from jax.experimental.pallas import tpu as pltpu


def _round_up(x, m):
    return (x + m - 1) // m * m


def _decoder_kernel(x_ref, w_ref, b_ref, o_ref):
    # x_ref: [TM, H] (compute dtype), w_ref: [H, L] (compute dtype),
    # b_ref: [1, L] (f32), o_ref: [TM, L] (f32).
    logits = jnp.dot(x_ref[...], w_ref[...], preferred_element_type=jnp.float32)
    logits = logits + b_ref[...]                 # broadcast [1, L] over rows
    # Numerically-stable row-wise softmax in f32 (safe on v5e: no bf16 VPU/EUP).
    m = jnp.max(logits, axis=-1, keepdims=True)
    e = jnp.exp(logits - m)
    denom = jnp.sum(e, axis=-1, keepdims=True)
    # Exact divide: denom is [TM, 1], negligible cost, and keeps each row's
    # probabilities summing to 1 to f32 precision.
    o_ref[...] = (e / denom).astype(o_ref.dtype)


# Only bother requesting a single buffer for VMEM-resident operands once they
# are big enough to matter (crucial for large H*L under v7x's 64 MiB / v5e's
# 16 MiB scoped default; irrelevant for tiny weights).
_SINGLE_BUFFER_BYTES = 1 << 20


def _resident_spec(shape, nbytes):
    """BlockSpec for an operand that stays VMEM-resident across the whole grid."""
    # Constant index_map => fetched exactly once; double-buffering it would only
    # double its VMEM footprint.
    if nbytes >= _SINGLE_BUFFER_BYTES and hasattr(pl, "Buffered"):
        return pl.BlockSpec(shape, lambda i: (0, 0), pipeline_mode=pl.Buffered(1))
    return pl.BlockSpec(shape, lambda i: (0, 0))


def prepare_decoder_params(weight, bias, compute_dtype=jnp.bfloat16):
    """Transpose / cast the Linear params once, outside the per-step hot path.

    weight: [label_num, hidden] (PyTorch nn.Linear layout); bias: [label_num].
    Returns (w_t [hidden, label_num] in compute_dtype, b2d [1, label_num] f32).
    """
    w_t = jnp.asarray(weight).T.astype(compute_dtype)
    b2d = jnp.asarray(bias).astype(jnp.float32).reshape(1, -1)
    return w_t, b2d


def decoder_forward(features, w_t, b2d, *, tile_m=1024):
    """features: [..., hidden]; w_t: [hidden, label_num]; b2d: [1, label_num]."""
    orig_shape = features.shape
    hidden = orig_shape[-1]
    assert w_t.shape[0] == hidden
    label_num = w_t.shape[1]
    compute_dtype = w_t.dtype

    # Ideally the upstream layer already emits compute_dtype activations; this
    # cast is a no-op when dtypes already match.
    x2d = features.reshape(-1, hidden).astype(compute_dtype)        # [M, H]
    m_rows = x2d.shape[0]

    # --- M tiling -------------------------------------------------------------
    # Multiple of 8 sublanes; capped so the grid has >= 2 steps (keeps both v7x
    # TensorCores busy through the "parallel" axis; neutral on v5e/v6e).
    m8 = _round_up(m_rows, 8)
    tm = min(tile_m, max(8, _round_up(pl.cdiv(m8, 2), 8)))
    grid_m = pl.cdiv(m_rows, tm)   # ragged last block handled by masked store

    x_bytes = x2d.dtype.itemsize
    w_bytes = w_t.dtype.itemsize
    out_bytes = jnp.dtype(jnp.float32).itemsize
    w_nbytes = hidden * label_num * w_bytes
    b_nbytes = label_num * 4
    w_bufs = 1 if w_nbytes >= _SINGLE_BUFFER_BYTES else 2

    # VMEM budget: double-buffered x/out tiles + resident W/b, +25% headroom,
    # 4 MiB floor (internal scratch / lane padding of narrow tiles), capped at
    # v7x's 64 MiB physical VMEM.
    footprint = (2 * tm * hidden * x_bytes
                 + 2 * tm * label_num * out_bytes
                 + w_bufs * (w_nbytes + b_nbytes))
    vmem_limit = int(min(max(footprint * 5 // 4, 4 << 20), 64 << 20))

    cost = pl.CostEstimate(
        flops=2 * m_rows * hidden * label_num,
        transcendentals=m_rows * label_num,
        bytes_accessed=(m_rows * hidden * x_bytes
                        + w_nbytes + b_nbytes
                        + m_rows * label_num * out_bytes),
    )

    # TODO(synk): for vocab-scale label_num (resident W no longer fits VMEM,
    # esp. v7x's 64 MiB), add an innermost "arbitrary" L grid axis streaming
    # (H, 256)-wide W blocks with online-softmax (running max/sum scratch,
    # finalize on the last L step).
    out2d = pl.pallas_call(
        _decoder_kernel,
        out_shape=jax.ShapeDtypeStruct((m_rows, label_num), jnp.float32),
        grid=(grid_m,),
        in_specs=[
            pl.BlockSpec((tm, hidden), lambda i: (i, 0)),           # x: tiled over M
            _resident_spec((hidden, label_num), w_nbytes),          # W: VMEM-resident
            _resident_spec((1, label_num), b_nbytes),               # b: VMEM-resident
        ],
        out_specs=pl.BlockSpec((tm, label_num), lambda i: (i, 0)),  # natural width
        compiler_params=pltpu.CompilerParams(
            dimension_semantics=("parallel",),
            vmem_limit_bytes=vmem_limit,
        ),
        cost_estimate=cost,
    )(x2d, w_t, b2d)

    return out2d.reshape(*orig_shape[:-1], label_num)


if __name__ == "__main__":
    # Small deterministic config consistent with the module:
    #   args.att_hidden_size = 32, args.label_num = 16
    B, S, H, L = 2, 8, 32, 16

    key = jax.random.PRNGKey(0)
    k_feat, k_w, k_b = jax.random.split(key, 3)

    features = jax.random.normal(k_feat, (B, S, H), dtype=jnp.float32)
    # Deterministic synthetic Linear params (PyTorch layout: weight [L, H]).
    weight = jax.random.normal(k_w, (L, H), dtype=jnp.float32) * 0.1
    bias = jax.random.normal(k_b, (L,), dtype=jnp.float32) * 0.1

    # Params prepared once (outside the hot path), reused for every forward.
    w_t, b2d = prepare_decoder_params(weight, bias)

    pred = decoder_forward(features, w_t, b2d)
    pred = jax.block_until_ready(pred)

    # Reference uses the same bf16-rounded matmul inputs the kernel sees
    # (the MXU accumulates in f32; bias add and softmax stay f32).
    xq = features.astype(jnp.bfloat16).astype(jnp.float32)
    wq = weight.astype(jnp.bfloat16).astype(jnp.float32)
    ref = jax.nn.softmax(xq @ wq.T + bias, axis=-1)

    assert pred.shape == (B, S, L)
    assert jnp.allclose(pred, ref, atol=1e-3, rtol=1e-3)
    assert jnp.allclose(jnp.sum(pred, axis=-1), 1.0, atol=1e-5)
    assert bool(jnp.all(pred >= 0.0))

    print("KERNEL_OK")
</pallas_src>

<mosaic_0001>
module attributes {stable_mosaic.version = 11 : i64} {
  func.func @_decoder_kernel(%arg0: i32, %arg1: memref<8x32xbf16, #tpu.memory_space<vmem>>, %arg2: memref<32x16xbf16, #tpu.memory_space<vmem>>, %arg3: memref<1x16xf32, #tpu.memory_space<vmem>>, %arg4: memref<8x16xf32, #tpu.memory_space<vmem>>) attributes {dimension_semantics = [#tpu.dimension_semantics<parallel>], iteration_bounds = array<i64: 2>, scalar_prefetch = 0 : i64, scratch_operands = 0 : i64, tpu.core_type = #tpu.core_type<tc>, window_params = [{transform_indices = @transform_0, window_bounds = array<i64: 8, 32>}, {pipeline_mode = #tpu.pipeline_mode<synchronous>, transform_indices = @transform_1, window_bounds = array<i64: 32, 16>}, {pipeline_mode = #tpu.pipeline_mode<synchronous>, transform_indices = @transform_2, window_bounds = array<i64: 1, 16>}, {transform_indices = @transform_3, window_bounds = array<i64: 8, 16>}]} {
    %c0 = arith.constant 0 : index
    %c0_0 = arith.constant 0 : index
    %0 = vector.load %arg1[%c0, %c0_0] : memref<8x32xbf16, #tpu.memory_space<vmem>>, vector<8x32xbf16>
    %c0_1 = arith.constant 0 : index
    %c0_2 = arith.constant 0 : index
    %1 = vector.load %arg2[%c0_1, %c0_2] : memref<32x16xbf16, #tpu.memory_space<vmem>>, vector<32x16xbf16>
    %cst = arith.constant dense<0.000000e+00> : vector<8x16xf32>
    %2 = tpu.matmul %0, %1, %cst {dimension_numbers = #tpu.dot_dimension_numbers<[1], [0], [0], [1], [0, 0, 1, 1], [], []>} : vector<8x32xbf16>, vector<32x16xbf16>, vector<8x16xf32> -> vector<8x16xf32>
    %c0_3 = arith.constant 0 : index
    %c0_4 = arith.constant 0 : index
    %3 = vector.load %arg3[%c0_3, %c0_4] : memref<1x16xf32, #tpu.memory_space<vmem>>, vector<1x16xf32>
    %4 = vector.broadcast %3 : vector<1x16xf32> to vector<8x16xf32>
    %5 = arith.addf %2, %4 : vector<8x16xf32>
    %cst_5 = arith.constant dense<0xFF800000> : vector<8xf32>
    %6 = vector.multi_reduction <maximumf>, %5, %cst_5 [1] : vector<8x16xf32> to vector<8xf32>
    %7 = vector.shape_cast %6 : vector<8xf32> to vector<8x1xf32>
    %8 = vector.broadcast %7 : vector<8x1xf32> to vector<8x16xf32>
    %9 = arith.subf %5, %8 : vector<8x16xf32>
    %10 = math.exp %9 : vector<8x16xf32>
    %cst_6 = arith.constant dense<0.000000e+00> : vector<8xf32>
    %11 = vector.multi_reduction <add>, %10, %cst_6 [1] : vector<8x16xf32> to vector<8xf32>
    %12 = vector.shape_cast %11 : vector<8xf32> to vector<8x1xf32>
    %13 = vector.broadcast %12 : vector<8x1xf32> to vector<8x16xf32>
    %14 = arith.divf %10, %13 : vector<8x16xf32>
    %c0_7 = arith.constant 0 : index
    %c0_8 = arith.constant 0 : index
    %15 = vector.load %arg4[%c0_7, %c0_8] : memref<8x16xf32, #tpu.memory_space<vmem>>, vector<8x16xf32>
    tpu.vector_store %arg4[%c0_7, %c0_8], %14 {strides = array<i32>} : memref<8x16xf32, #tpu.memory_space<vmem>>, vector<8x16xf32>,
    return
  }
  func.func @transform_0(%arg0: i32) -> (i32, i32) {
    %c0_i32 = arith.constant 0 : i32
    %c0_i32_0 = arith.constant 0 : i32
    return %arg0, %c0_i32 : i32, i32
  }
  func.func @transform_1(%arg0: i32) -> (i32, i32) {
    %c0_i32 = arith.constant 0 : i32
    %c0_i32_0 = arith.constant 0 : i32
    %c0_i32_1 = arith.constant 0 : i32
    return %c0_i32, %c0_i32_0 : i32, i32
  }
  func.func @transform_2(%arg0: i32) -> (i32, i32) {
    %c0_i32 = arith.constant 0 : i32
    %c0_i32_0 = arith.constant 0 : i32
    %c0_i32_1 = arith.constant 0 : i32
    return %c0_i32, %c0_i32_0 : i32, i32
  }
  func.func @transform_3(%arg0: i32) -> (i32, i32) {
    %c0_i32 = arith.constant 0 : i32
    %c0_i32_0 = arith.constant 0 : i32
    return %arg0, %c0_i32 : i32, i32
  }
}

</mosaic_0001>

<bundles_post_ra>
// kernel: tpu_custom_call.1
= control target key start
LH: loop header
LB: loop body
LE: loop exit
PB: predicated region body
PF: predicated region fallthrough
CT: control target
= control target key end

     0   :  { %8 = vsyncpa [#allocation3], 0  ;;  %s552_s0 = inlined_call_operand.vmem [shape: bf16[16,32], index: 0, kind: input, shape index: {}]   ;;  %s553_s1 = inlined_call_operand.vmem [shape: bf16[32,16], index: 1, kind: input, shape index: {}]   ;;  %s554_s2 = inlined_call_operand.vmem [shape: f32[1,16], index: 2, kind: input, shape index: {}]   ;;  %s555_s3 = inlined_call_operand.hbm [shape: f32[16,16], index: 3, kind: output, shape index: {}]  }
   0x1   :  { %10 = vsyncpa [#allocation3 + $0x1], 0  ;;  %s455_s12 = smov 0   ;;  %s457_s13 = smov 0  }
   0x2   :  { %s459_s14 = smov 0   ;;  %s461_s15 = smov 0  }
   0x3 LB: > { %s476_s16 = sadd.s32 4294967295, %s433_s15   ;;  %s306_s17 = sadd.s32 4294967294, %s433_s15   ;;  %s433_s15 = sphi %s461_s15, %s561_s15   ;;  %s429_s14 = sphi %s459_s14, %s560_s14   ;;  %s425_s13 = sphi %s457_s13, %s559_s13   ;;  %s421_s12 = sphi %s455_s12, %s558_s12  }
   0x4   : > { %s480_s18 = sadd.s32 1, %s433_s15   ;;  %s91_s19 = sadd.s32 1, %s429_s14 }
   0x5   : > { %s88_s20 = ssub.s32 %s433_s15, %s480_s18  ;;  %p101_p0 = scmp.ne.s32.totalorder %s429_s14, %s425_s13 }
   0x6   : > { %p89_p1 = scmp.eq.s32.totalorder %s88_s20, 0  ;;  %p102_p2 = scmp.eq.s32.totalorder %s476_s16, 1 }
   0x7   : > { %p107_p3 = scmp.ne.s32.totalorder %s425_s13, %s421_s12  ;;  %p108_p4 = scmp.eq.s32.totalorder %s306_s17, 1 }
   0x8   : > { %s491_s21 = scalar_select %p89_p1, %s429_s14, %s91_s19  }
   0x9   : > { %p493_p5 = por %p102_p2, %p101_p0  ;;  %p497_p6 = por %p108_p4, %p107_p3 }
   0xa   : > { %p309_p7 = scmp.ge.s32.totalorder %s433_s15, 1  ;;  %p139_p8 = scmp.lt.s32.totalorder %s433_s15, 3 }
   0xc   : > { %p140_p9 = pnand %p309_p7, %p139_p8 }
   0xd   : > { %p162_p10 = scmp.lt.s32.totalorder (!%p140_p9), %s476_s16, 1  ;;  %s159_s8 = sand.u32 (!%p140_p9), 1, %s425_s13  }
   0xe   : > { %143 = sbr.rel (%p140_p9) target bundleno = 422 (0x1a6), region = 32  ;;  %s310_s9 = sshll.u32 (!%p140_p9), %s159_s8, 3 }
   0xf   : > { %s322_s10 = sshll.u32 (!%p140_p9), %s476_s16, 3  ;;  %s161_s20 = scalar_lea.vmem (!%p140_p9), [#allocation2], %s310_s9 }
  0x10   : > { %s242_s19 = scalar_lea.hbm (!%p140_p9), %s555_s3, %s322_s10  ;;  %s244_s24 = sshll.u32 (!%p140_p9), %s161_s20, 4  ;;  %s245_s24 = int_to_ptr.vmem [resolvable:$true] %s244_s24 }
  0x11   : > { %s246_s25 = sshll.u32 (!%p140_p9), %s242_s19, 4  ;;  %s391_s30 = scalar_lea.hbm (!%p140_p9), %s555_s3, 16  ;;  %s247_s25 = int_to_ptr.hbm [resolvable:$true] %s246_s25 }
  0x12   : > { %s385_s26 = sshra.s32 (!%p140_p9), %s247_s25, 4  ;;  %s386_s26 = int_to_ptr.hbm [resolvable:$true] %s385_s26 }
  0x13   : > { %v326_v0 = vld [vmem:[%s553_s1 + $0x8] sm:$0xff]  ;;  %v325_v1 = vld [vmem:[%s553_s1] sm:$0xff]  ;;  %s163_s28 = scalar_select %p162_p10, %s476_s16, 1  ;;  %vm188_vm0 = vcmask 261120   ;;  %vm205_vm1 = vcmask 130048  }
  0x14   : > { %198 = vmatpush.bf16.msra.mxu0 %v326_v0  ;;  %v366_v3 = vld [vmem:[%s554_s2] ss:$0 sm:$0xff]  ;;  %s232_s16 = scalar_lea.sflag [#allocation3], %s159_s8  ;;  %s387_s27 = scalar_lea.hbm %s386_s26, 8 }
  0x15   : > { %s311_s29 = sshll.u32 %s163_s28, 2  ;;  %p388_p11 = scmp.ne.s32.totalorder %s386_s26, %s387_s27 }
  0x16   : > { %s165_s5 = scalar_lea.vmem %s552_s0, %s311_s29  ;;  %p392_p0 = scmp.lt.s32.totalorder %s386_s26, %s555_s3 }
  0x17   : > { %v167_v2 = vld [vmem:[%s165_s5] sm:$0xf]  ;;  %p389_p12 = pnand %p388_p11, %p493_p5  ;;  %p393_p1 = scmp.lt.s32.totalorder %s391_s30, %s387_s27 }
  0x18   : > { %199 = vmatpush.bf16.msra.mxu0 %v325_v1 }
  0x19   : > { %p390_p13 = pneg %p389_p12  ;;  %p394_p2 = por %p393_p1, %p392_p0 }
  0x1b   : > { %320 = vmatmul.msk.bf16.vlgmr.msra.gmra.mxu0 %vm188_vm0, %v167_v2  ;;  %p395_p3 = pnand %p394_p2, %p390_p13 }
  0x98   : > { %v201_v4 = vpop.f32.mrf.mxu0 }
  0x99   : > { %v202_v5 = vadd.f32 %v366_v3, %v201_v4 }
  0x9b   : > { %v206_v6 = vsel %vm205_vm1, %v202_v5, -inf }
  0x9c   : > { %207 = vmax.xlane.f32.xlu0 %v206_v6 }
  0xa0   : > { %v203_v7 = vpop.f32.mrf.mxu0 }
 0x10f   : > { %v208_v8 = vpop.xlane.xlu0 %207 }
 0x110   : > { %v209_v9 = vsub.f32 %v202_v5, %v208_v8 }
 0x112   : > { %v210_v10 = vmul.f32 1.442695, %v209_v9 }
 0x114   : > { %367 = vpow2.f32 %v210_v10 }
 0x11a   : > { %v368_v11 = vpop.eup %367 }
 0x11b   : > { %v212_v12 = vsel %vm205_vm1, %v368_v11, 0.0 }
 0x11c   : > { %213 = vadd.xlane.f32.xlu0 %v212_v12 }
 0x18f   : > { %v214_v13 = vpop.xlane.xlu0 %213 }
 0x190   : > { %369 = vrcp.f32 %v214_v13  ;;  %v226_v17 = vand.u32 2147483648, %v214_v13  ;;  %v224_v19 = vand.u32 2147483647, %v214_v13  ;;  %vm220_vm3 = vweird.f32 %v214_v13 }
 0x192   : > { %v227_v21 = vor.u32 1.1754944e-38, %v226_v17  ;;  %vm225_vm5 = vcmp.eq.f32.partialorder %v224_v19, 8.507059e+37 }
 0x196   : > { %v370_v14 = vpop.eup %369 }
 0x197   : > { %v216_v15 = vmul.f32 %v370_v14, %v214_v13  ;;  %vm221_vm2 = vweird.f32 %v370_v14 }
 0x198   : > { %vm222_vm4 = vmor %vm220_vm3, %vm221_vm2 }
 0x199   : > { %v217_v16 = vsub.f32 1.0, %v216_v15 }
 0x19b   : > { %v218_v18 = vmul.f32 %v370_v14, %v217_v16 }
 0x19d   : > { %v219_v20 = vadd.f32 %v370_v14, %v218_v18 }
 0x19f   : > { %v223_v22 = vsel %vm222_vm4, %v370_v14, %v219_v20 }
 0x1a0   : > { %v228_v23 = vsel %vm225_vm5, %v227_v21, %v223_v22 }
 0x1a1   : > { %v229_v24 = vmul.f32 %v368_v11, %v228_v23 }
 0x1a3   : > { %230 = vst.msk [vmem:[%s161_s20] sm:$0xff] %vm205_vm1, %v229_v24 }
 0x1a4   : > { %398 = shalt.err (!%p395_p3)
}
 0x1a5   : > { %327 = dma.vmem_to_hbm [thread:$0]  (%p493_p5), %s245_s24, 128, %s247_s25, %s232_s16  }
 0x1a6 PF: > { %p333_p4 = scmp.ge.s32.totalorder %s433_s15, 2  ;;  %s258_s6 = sand.u32 1, %s421_s12  }
 0x1a7   : > { %s259_s7 = scalar_lea.sflag [#allocation3], %s258_s6 }
 0x1a8   : > { %p330_p7 = pnand %p333_p4, %p497_p6 }
 0x1aa   : > { %p331_p8 = pneg %p330_p7 }
 0x1ac   : > { %416 = dma.done.wait (%p331_p8), %s259_s7, 128  }
 0x1ad   : > { %418 = vsyncadd (%p331_p8), %s259_s7, 4294967168  ;;  %p13_p9 = scmp.ge.s32.totalorder %s480_s18, 4   ;;  %s558_s12 = smov %s425_s13 }
 0x1ae   : > { %s559_s13 = smov %s429_s14  ;;  %s560_s14 = smov %s491_s21 }
 0x1af   : > { %s561_s15 = smov %s480_s18  ;;  %15 = sbr.rel (!%p13_p9) target bundleno = 3 (0x3), region = 67 }
 0x1b4   :  { %265 = vsyncpa [#allocation3], 1 }
 0x1b5   :  { %267 = vsyncpa [#allocation3 + $0x1], 1 }

</bundles_post_ra>
